<compile_context>
chip_gen: v6e
topology: v6e:2x2x1
jax: 0.10.0
libtpu: 0.0.40
codegen_flags: <defaults>
</compile_context>

<pallas_src>
import functools

import jax
import jax.numpy as jnp
from jax.experimental import pallas as pl
from jax.experimental.pallas import tpu as pltpu


def _round_up(x, m):
    return (x + m - 1) // m * m


def _vmem_limit_bytes():
    """Scoped-VMEM limit: ~3/4 of physical, capped at 96 MiB (v5e/v6e have
    128 MiB physical, v7x has 64 MiB -> ~48 MiB)."""
    cap = 64 * 1024 * 1024
    try:
        cap = int(pltpu.get_tpu_info().vmem_capacity_bytes)
    except Exception:
        pass
    return int(min(cap * 3 // 4, 96 * 1024 * 1024))


def _pick_tiles(N, H, S, B, Cp, Vp, tv_cap, tm_req, budget_bytes):
    """Pick (TM, TV) within a VMEM budget; keep >=2 row tiles for megacore."""
    TM = min(int(tm_req), _round_up(N, 8))
    TV = min(int(tv_cap), Vp)

    # Keep at least 2 row tiles so the parallel row axis can span both
    # TensorCores (v7x) when the problem is big enough to care.
    if N > 256 and _round_up(N, TM) // TM < 2:
        TM = max(128, _round_up(pl.cdiv(N, 2), 8))

    def footprint(tm_, tv_):
        return (2 * tm_ * H * 2          # hidden bf16 (double buffered)
                + 2 * H * tv_ * 2        # W tile bf16
                + 2 * tv_ * 4            # bias tile
                + 2 * H * 4              # copy-gate weight row
                + 2 * 4                  # copy-gate bias
                + 2 * tm_ * S * 4        # attn rows f32
                + 2 * S * B * Cp * 4     # flattened src_map f32
                + 2 * tm_ * tv_ * 4      # out_prob tile f32
                + 2 * tm_ * Cp * 4       # copy_ext tile f32
                + 3 * tm_ * 4)           # online-softmax scratch

    while footprint(TM, TV) > budget_bytes:
        can_halve_tv = (TV >= 512 and (TV // 2) % 128 == 0
                        and Vp % (TV // 2) == 0)
        if can_halve_tv and TV >= TM:
            TV //= 2
        elif TM > 128:
            TM = _round_up(TM // 2, 8)
        elif can_halve_tv:
            TV //= 2
        else:
            break
    return TM, TV


def _copy_gen_kernel(batch,                                   # static python int
                     h_ref, w_ref, b_ref, wc_ref, bc_ref, attn_ref, smap_ref,
                     outp_ref, copy_ref,
                     m_scr, l_scr, g_scr):
    """Grid = (row_tiles, phase, vocab_tiles)."""
    i = pl.program_id(0)
    p = pl.program_id(1)
    k = pl.program_id(2)
    tm = h_ref.shape[0]
    cp = copy_ref.shape[1]

    @pl.when((p == 0) & (k == 0))
    def _init_and_copy():
        m_scr[...] = jnp.full_like(m_scr, -1e30)
        l_scr[...] = jnp.zeros_like(l_scr)

        # Copy gate as a VPU row reduction; f32 accumulation over bf16 hidden.
        h32 = h_ref[...].astype(jnp.float32)                    # (TM, H)
        gate = (jnp.sum(h32 * wc_ref[...], axis=-1, keepdims=True)
                + bc_ref[...])                                  # (TM,1)+(1,1)
        p_copy = jax.nn.sigmoid(gate)                           # (TM, 1)
        g_scr[...] = 1.0 - p_copy

        # copy_prob = attn * p_copy scattered to the extended vocab.
        # Row n of the tlen-major layout belongs to batch n % batch, so
        # accumulate one masked (TM,S)x(S,Cp) f32 matmul per batch (no
        # (TM, B*Cp) intermediate ever materialized in VMEM).
        copy_local = attn_ref[...] * p_copy                     # (TM, S) f32
        row_b = (jax.lax.broadcasted_iota(jnp.int32, (tm, 1), 0)
                 + i * tm) % batch
        acc = jnp.zeros((tm, cp), jnp.float32)
        for bb in range(batch):                                 # static unroll
            masked = jnp.where(row_b == bb, copy_local, 0.0)
            acc = acc + jnp.dot(masked, smap_ref[:, bb * cp:(bb + 1) * cp],
                                preferred_element_type=jnp.float32)
        copy_ref[...] = acc.astype(copy_ref.dtype)

    # Vocab-tile logits: bf16 x bf16 on the MXU, f32 accumulation.
    logits = jnp.dot(h_ref[...], w_ref[...],
                     preferred_element_type=jnp.float32) + b_ref[...]

    @pl.when(p == 0)
    def _stats():
        m_prev = m_scr[...]
        m_new = jnp.maximum(m_prev, jnp.max(logits, axis=-1, keepdims=True))
        l_scr[...] = (l_scr[...] * jnp.exp(m_prev - m_new)
                      + jnp.sum(jnp.exp(logits - m_new), axis=-1, keepdims=True))
        m_scr[...] = m_new

    @pl.when(p == 1)
    def _write():
        l = l_scr[...]
        inv = pl.reciprocal(l, approx=True)                     # EUP vrcp
        inv = inv * (2.0 - l * inv)                             # Newton step
        prob = jnp.exp(logits - m_scr[...]) * inv
        outp_ref[...] = (prob * g_scr[...]).astype(outp_ref.dtype)


def prepare_copy_generator_params(W, b, Wc, bc, *, tv=1024):
    """One-time parameter preprocessing (hoisted out of the per-call hot path):
    bf16 cast of the big generator matrix + lane/tile padding of the vocab.
    W: (H, V); b: (V,); Wc: (H, 1); bc: (1,)."""
    H, V = W.shape
    TV = min(int(tv), _round_up(V, 128))
    Vp = _round_up(V, TV)
    W_p = jnp.zeros((H, Vp), jnp.bfloat16).at[:, :V].set(W.astype(jnp.bfloat16))
    # Padded vocab columns get bias -1e30 so they contribute exactly 0.
    b_p = jnp.full((1, Vp), -1e30, jnp.float32).at[0, :V].set(
        b.astype(jnp.float32))
    wc_row = jnp.reshape(Wc, (1, H)).astype(jnp.float32)
    bc_s = jnp.reshape(bc, (1, 1)).astype(jnp.float32)
    return {"W": W_p, "b": b_p, "wc": wc_row, "bc": bc_s,
            "H": H, "V": V, "Vp": Vp, "TV": TV}


def copy_generator_forward(hidden, attn, src_map, params, batch, *, tm=512):
    """hidden: (batch*tlen, H) tlen-major rows; attn: (batch*tlen, slen);
    src_map: (slen, batch, cvocab); params from prepare_copy_generator_params.
    Returns (batch*tlen, V + cvocab)."""
    N, H = hidden.shape
    _, S = attn.shape
    S_, B, C = src_map.shape
    assert B == batch and S_ == S and H == params["H"]
    V, Vp = params["V"], params["Vp"]

    Cp = _round_up(C, 128)                  # lane-dense copy output
    vmem_limit = _vmem_limit_bytes()
    TM, TV = _pick_tiles(N, H, S, B, Cp, Vp, params["TV"], tm,
                         budget_bytes=vmem_limit * 3 // 4)
    Np = _round_up(N, TM)
    nR, nV = Np // TM, Vp // TV
    assert Np % TM == 0 and Vp % TV == 0

    # ---- per-call operand prep (hidden streamed in bf16, attn/src_map f32) ----
    h_p = hidden.astype(jnp.bfloat16)
    a_p = attn.astype(jnp.float32)
    if Np != N:
        h_p = jnp.zeros((Np, H), jnp.bfloat16).at[:N].set(h_p)
        a_p = jnp.zeros((Np, S), jnp.float32).at[:N].set(a_p)
    # src_map (S, B, C) -> lane-padded flattened (S, B*Cp); f32 keeps the copy
    # distribution exact (one matmul input is the raw attention * gate).
    smap_p = jnp.zeros((S, B, Cp), jnp.float32).at[:, :, :C].set(
        src_map.astype(jnp.float32)).reshape(S, B * Cp)

    kernel = functools.partial(_copy_gen_kernel, B)

    grid_spec = pltpu.PrefetchScalarGridSpec(
        num_scalar_prefetch=0,
        grid=(nR, 2, nV),
        in_specs=[
            pl.BlockSpec((TM, H), lambda i, p, k: (i, 0)),       # hidden (bf16)
            pl.BlockSpec((H, TV), lambda i, p, k: (0, k)),       # W vocab tile (bf16)
            pl.BlockSpec((1, TV), lambda i, p, k: (0, k)),       # b vocab tile
            pl.BlockSpec((1, H), lambda i, p, k: (0, 0)),        # copy-gate weight row
            pl.BlockSpec((1, 1), lambda i, p, k: (0, 0)),        # copy-gate bias
            pl.BlockSpec((TM, S), lambda i, p, k: (i, 0)),       # attn rows
            pl.BlockSpec((S, B * Cp), lambda i, p, k: (0, 0)),   # flattened src_map
        ],
        out_specs=[
            # During the stats phase (p == 0) the index stays pinned at (i, 0),
            # so no block is written back before phase 1 fills it.
            pl.BlockSpec((TM, TV), lambda i, p, k: (i, p * k)),  # out_prob
            pl.BlockSpec((TM, Cp), lambda i, p, k: (i, 0)),      # copy_ext
        ],
        scratch_shapes=[
            pltpu.VMEM((TM, 1), jnp.float32),   # running max m
            pltpu.VMEM((TM, 1), jnp.float32),   # running sum l
            pltpu.VMEM((TM, 1), jnp.float32),   # 1 - p_copy
        ],
    )

    out_p, copy_p = pl.pallas_call(
        kernel,
        grid_spec=grid_spec,
        out_shape=(jax.ShapeDtypeStruct((Np, Vp), jnp.float32),
                   jax.ShapeDtypeStruct((Np, Cp), jnp.float32)),
        compiler_params=pltpu.CompilerParams(
            dimension_semantics=("parallel", "arbitrary", "arbitrary"),
            vmem_limit_bytes=vmem_limit),
    )(h_p, params["W"], params["b"], params["wc"], params["bc"], a_p, smap_p)

    # Trim padding to the exact module output width.  When V and C are already
    # multiples of 128 (typical real vocabs) the column slices are no-ops.
    return jnp.concatenate([out_p[:N, :V], copy_p[:N, :C]], axis=1)


def _reference(hidden, attn, src_map, W, b, Wc, bc, batch):
    # Plain-JAX reference mirroring the PyTorch forward (p_factor <= 2 branch).
    logits = hidden @ W + b
    prob = jax.nn.softmax(logits, axis=1)
    p_copy = jax.nn.sigmoid(hidden @ Wc + bc)
    out_prob = prob * (1.0 - p_copy)
    copy_prob = attn * p_copy
    N, S = attn.shape
    S_, B, C = src_map.shape
    T = N // B
    cp = jnp.transpose(copy_prob.reshape(T, B, S), (1, 0, 2))   # (B, T, S)
    sm = jnp.transpose(src_map, (1, 0, 2))                      # (B, S, C)
    ext = jnp.einsum("bts,bsc->btc", cp, sm)
    ext = jnp.transpose(ext, (1, 0, 2)).reshape(N, C)
    return jnp.concatenate([out_prob, ext], axis=1)


if __name__ == "__main__":
    key = jax.random.PRNGKey(0)
    k1, k2, k3, k4, k5, k6, k7 = jax.random.split(key, 7)

    # Small shapes consistent with the module's forward.
    batch, tlen = 2, 4
    hidden_size = 32
    num_labels = 16     # tgt vocab size (V)
    slen = 8            # source length
    cvocab = 8          # extended-vocab extra words
    N = batch * tlen

    bound = 1.0 / (hidden_size ** 0.5)
    W = jax.random.uniform(k1, (hidden_size, num_labels), jnp.float32, -bound, bound)
    b = jax.random.uniform(k2, (num_labels,), jnp.float32, -bound, bound)
    Wc = jax.random.uniform(k3, (hidden_size, 1), jnp.float32, -bound, bound)
    bc = jax.random.uniform(k4, (1,), jnp.float32, -bound, bound)

    hidden = jax.random.normal(k5, (N, hidden_size), jnp.float32)
    attn = jax.nn.softmax(jax.random.normal(k6, (N, slen), jnp.float32), axis=1)
    src_idx = jax.random.randint(k7, (slen, batch), 0, cvocab)
    src_map = jax.nn.one_hot(src_idx, cvocab, dtype=jnp.float32)  # (slen, batch, cvocab)

    # One-time parameter prep (cast/pad of W hoisted out of the hot path).
    params = prepare_copy_generator_params(W, b, Wc, bc)

    out = copy_generator_forward(hidden, attn, src_map, params, batch)
    out = jax.block_until_ready(out)

    ref = _reference(hidden, attn, src_map, W, b, Wc, bc, batch)
    assert out.shape == (N, num_labels + cvocab)
    # bf16 MXU inputs -> slightly looser tolerance than pure f32.
    assert jnp.allclose(out, ref, atol=5e-3, rtol=5e-3)

    print("KERNEL_OK")
</pallas_src>

<mosaic_0001>
module attributes {stable_mosaic.version = 11 : i64} {
  func.func @_copy_gen_kernel(%arg0: i32, %arg1: i32, %arg2: i32, %arg3: memref<8x32xbf16, #tpu.memory_space<vmem>>, %arg4: memref<32x128xbf16, #tpu.memory_space<vmem>>, %arg5: memref<1x128xf32, #tpu.memory_space<vmem>>, %arg6: memref<1x32xf32, #tpu.memory_space<vmem>>, %arg7: memref<1x1xf32, #tpu.memory_space<vmem>>, %arg8: memref<8x8xf32, #tpu.memory_space<vmem>>, %arg9: memref<8x256xf32, #tpu.memory_space<vmem>>, %arg10: memref<8x128xf32, #tpu.memory_space<vmem>>, %arg11: memref<8x128xf32, #tpu.memory_space<vmem>>, %arg12: memref<8x1xf32, #tpu.memory_space<vmem>>, %arg13: memref<8x1xf32, #tpu.memory_space<vmem>>, %arg14: memref<8x1xf32, #tpu.memory_space<vmem>>) attributes {dimension_semantics = [#tpu.dimension_semantics<parallel>, #tpu.dimension_semantics<arbitrary>, #tpu.dimension_semantics<arbitrary>], iteration_bounds = array<i64: 1, 2, 1>, scalar_prefetch = 0 : i64, scratch_operands = 3 : i64, tpu.core_type = #tpu.core_type<tc>, window_params = [{transform_indices = @transform_0, window_bounds = array<i64: 8, 32>}, {transform_indices = @transform_1, window_bounds = array<i64: 32, 128>}, {transform_indices = @transform_2, window_bounds = array<i64: 1, 128>}, {pipeline_mode = #tpu.pipeline_mode<synchronous>, transform_indices = @transform_3, window_bounds = array<i64: 1, 32>}, {pipeline_mode = #tpu.pipeline_mode<synchronous>, transform_indices = @transform_4, window_bounds = array<i64: 1, 1>}, {transform_indices = @transform_5, window_bounds = array<i64: 8, 8>}, {pipeline_mode = #tpu.pipeline_mode<synchronous>, transform_indices = @transform_6, window_bounds = array<i64: 8, 256>}, {transform_indices = @transform_7, window_bounds = array<i64: 8, 128>}, {transform_indices = @transform_8, window_bounds = array<i64: 8, 128>}]} {
    %c0_i32 = arith.constant 0 : i32
    %0 = arith.cmpi eq, %arg1, %c0_i32 : i32
    %c0_i32_0 = arith.constant 0 : i32
    %1 = arith.cmpi eq, %arg2, %c0_i32_0 : i32
    %2 = arith.andi %0, %1 : i1
    %3 = arith.extui %2 : i1 to i32
    %c0_i32_1 = arith.constant 0 : i32
    %4 = arith.cmpi ne, %3, %c0_i32_1 : i32
    scf.if %4 {
      %cst_10 = arith.constant -1.000000e+30 : f32
      %17 = vector.broadcast %cst_10 : f32 to vector<8x1xf32>
      %c0_11 = arith.constant 0 : index
      %c0_12 = arith.constant 0 : index
      %18 = vector.load %arg12[%c0_11, %c0_12] : memref<8x1xf32, #tpu.memory_space<vmem>>, vector<8x1xf32>
      tpu.vector_store %arg12[%c0_11, %c0_12], %17 {strides = array<i32>} : memref<8x1xf32, #tpu.memory_space<vmem>>, vector<8x1xf32>,
      %cst_13 = arith.constant 0.000000e+00 : f32
      %19 = vector.broadcast %cst_13 : f32 to vector<8x1xf32>
      %c0_14 = arith.constant 0 : index
      %c0_15 = arith.constant 0 : index
      %20 = vector.load %arg13[%c0_14, %c0_15] : memref<8x1xf32, #tpu.memory_space<vmem>>, vector<8x1xf32>
      tpu.vector_store %arg13[%c0_14, %c0_15], %19 {strides = array<i32>} : memref<8x1xf32, #tpu.memory_space<vmem>>, vector<8x1xf32>,
      %c0_16 = arith.constant 0 : index
      %c0_17 = arith.constant 0 : index
      %21 = vector.load %arg3[%c0_16, %c0_17] : memref<8x32xbf16, #tpu.memory_space<vmem>>, vector<8x32xbf16>
      %22 = arith.extf %21 : vector<8x32xbf16> to vector<8x32xf32>
      %c0_18 = arith.constant 0 : index
      %c0_19 = arith.constant 0 : index
      %23 = vector.load %arg6[%c0_18, %c0_19] : memref<1x32xf32, #tpu.memory_space<vmem>>, vector<1x32xf32>
      %24 = vector.broadcast %23 : vector<1x32xf32> to vector<8x32xf32>
      %25 = arith.mulf %22, %24 : vector<8x32xf32>
      %cst_20 = arith.constant dense<0.000000e+00> : vector<8xf32>
      %26 = vector.multi_reduction <add>, %25, %cst_20 [1] : vector<8x32xf32> to vector<8xf32>
      %27 = vector.shape_cast %26 : vector<8xf32> to vector<8x1xf32>
      %c0_21 = arith.constant 0 : index
      %c0_22 = arith.constant 0 : index
      %28 = vector.load %arg7[%c0_21, %c0_22] : memref<1x1xf32, #tpu.memory_space<vmem>>, vector<1x1xf32>
      %29 = vector.broadcast %28 : vector<1x1xf32> to vector<8x1xf32>
      %30 = arith.addf %27, %29 : vector<8x1xf32>
      %31 = arith.negf %30 : vector<8x1xf32>
      %32 = math.exp %31 : vector<8x1xf32>
      %cst_23 = arith.constant 1.000000e+00 : f32
      %33 = vector.broadcast %cst_23 : f32 to vector<8x1xf32>
      %34 = arith.addf %33, %32 : vector<8x1xf32>
      %35 = arith.divf %33, %34 : vector<8x1xf32>
      %cst_24 = arith.constant 1.000000e+00 : f32
      %36 = vector.broadcast %cst_24 : f32 to vector<8x1xf32>
      %37 = arith.subf %36, %35 : vector<8x1xf32>
      %c0_25 = arith.constant 0 : index
      %c0_26 = arith.constant 0 : index
      %38 = vector.load %arg14[%c0_25, %c0_26] : memref<8x1xf32, #tpu.memory_space<vmem>>, vector<8x1xf32>
      tpu.vector_store %arg14[%c0_25, %c0_26], %37 {strides = array<i32>} : memref<8x1xf32, #tpu.memory_space<vmem>>, vector<8x1xf32>,
      %c0_27 = arith.constant 0 : index
      %c0_28 = arith.constant 0 : index
      %39 = vector.load %arg8[%c0_27, %c0_28] : memref<8x8xf32, #tpu.memory_space<vmem>>, vector<8x8xf32>
      %40 = vector.broadcast %35 : vector<8x1xf32> to vector<8x8xf32>
      %41 = arith.mulf %39, %40 : vector<8x8xf32>
      %42 = tpu.iota {dimensions = array<i32: 0>} : vector<8x1xi32>
      %c8_i32 = arith.constant 8 : i32
      %43 = arith.muli %arg0, %c8_i32 : i32
      %44 = vector.broadcast %43 : i32 to vector<8x1xi32>
      %45 = arith.addi %42, %44 : vector<8x1xi32>
      %c2_i32 = arith.constant 2 : i32
      %c0_i32_29 = arith.constant 0 : i32
      %46 = arith.cmpi eq, %c2_i32, %c0_i32_29 : i32
      %c1_i32_30 = arith.constant 1 : i32
      %47 = arith.select %46, %c1_i32_30, %c2_i32 : i32
      %48 = vector.broadcast %47 : i32 to vector<8x1xi32>
      %49 = arith.remsi %45, %48 : vector<8x1xi32>
      %c0_i32_31 = arith.constant 0 : i32
      %50 = vector.broadcast %c0_i32_31 : i32 to vector<8x1xi32>
      %51 = arith.cmpi ne, %49, %50 : vector<8x1xi32>
      %c0_i32_32 = arith.constant 0 : i32
      %52 = vector.broadcast %c0_i32_32 : i32 to vector<8x1xi32>
      %53 = arith.cmpi slt, %49, %52 : vector<8x1xi32>
      %c0_i32_33 = arith.constant 0 : i32
      %54 = arith.cmpi slt, %47, %c0_i32_33 : i32
      %55 = vector.broadcast %54 : i1 to vector<8x1xi1>
      %56 = vector.broadcast %55 : vector<8x1xi1> to vector<8x1xi1>
      %57 = arith.xori %53, %56 : vector<8x1xi1>
      %58 = arith.andi %57, %51 : vector<8x1xi1>
      %59 = vector.broadcast %47 : i32 to vector<8x1xi32>
      %60 = arith.addi %49, %59 : vector<8x1xi32>
      %61 = arith.select %58, %60, %49 : vector<8x1xi1>, vector<8x1xi32>
      %cst_34 = arith.constant 0.000000e+00 : f32
      %62 = vector.broadcast %cst_34 : f32 to vector<8x128xf32>
      %c0_i32_35 = arith.constant 0 : i32
      %63 = vector.broadcast %c0_i32_35 : i32 to vector<8x1xi32>
      %64 = arith.cmpi eq, %61, %63 : vector<8x1xi32>
      %cst_36 = arith.constant 0.000000e+00 : f32
      %65 = vector.shape_cast %64 : vector<8x1xi1> to vector<8x1xi1>
      %66 = vector.broadcast %65 : vector<8x1xi1> to vector<8x8xi1>
      %67 = vector.broadcast %cst_36 : f32 to vector<8x8xf32>
      %68 = arith.select %66, %41, %67 : vector<8x8xi1>, vector<8x8xf32>
      %c0_37 = arith.constant 0 : index
      %c0_38 = arith.constant 0 : index
      %69 = vector.load %arg9[%c0_37, %c0_38] : memref<8x256xf32, #tpu.memory_space<vmem>>, vector<8x128xf32>
      %cst_39 = arith.constant dense<0.000000e+00> : vector<8x128xf32>
      %70 = tpu.matmul %68, %69, %cst_39 {dimension_numbers = #tpu.dot_dimension_numbers<[1], [0], [0], [1], [0, 0, 1, 1], [], []>} : vector<8x8xf32>, vector<8x128xf32>, vector<8x128xf32> -> vector<8x128xf32>
      %71 = arith.addf %62, %70 : vector<8x128xf32>
      %c1_i32_40 = arith.constant 1 : i32
      %72 = vector.broadcast %c1_i32_40 : i32 to vector<8x1xi32>
      %73 = arith.cmpi eq, %61, %72 : vector<8x1xi32>
      %cst_41 = arith.constant 0.000000e+00 : f32
      %74 = vector.shape_cast %73 : vector<8x1xi1> to vector<8x1xi1>
      %75 = vector.broadcast %74 : vector<8x1xi1> to vector<8x8xi1>
      %76 = vector.broadcast %cst_41 : f32 to vector<8x8xf32>
      %77 = arith.select %75, %41, %76 : vector<8x8xi1>, vector<8x8xf32>
      %c0_42 = arith.constant 0 : index
      %c128 = arith.constant 128 : index
      %78 = vector.load %arg9[%c0_42, %c128] : memref<8x256xf32, #tpu.memory_space<vmem>>, vector<8x128xf32>
      %cst_43 = arith.constant dense<0.000000e+00> : vector<8x128xf32>
      %79 = tpu.matmul %77, %78, %cst_43 {dimension_numbers = #tpu.dot_dimension_numbers<[1], [0], [0], [1], [0, 0, 1, 1], [], []>} : vector<8x8xf32>, vector<8x128xf32>, vector<8x128xf32> -> vector<8x128xf32>
      %80 = arith.addf %71, %79 : vector<8x128xf32>
      %c0_44 = arith.constant 0 : index
      %c0_45 = arith.constant 0 : index
      %81 = vector.load %arg11[%c0_44, %c0_45] : memref<8x128xf32, #tpu.memory_space<vmem>>, vector<8x128xf32>
      tpu.vector_store %arg11[%c0_44, %c0_45], %80 {strides = array<i32>} : memref<8x128xf32, #tpu.memory_space<vmem>>, vector<8x128xf32>,
    } else {
    }
    %c0 = arith.constant 0 : index
    %c0_2 = arith.constant 0 : index
    %5 = vector.load %arg3[%c0, %c0_2] : memref<8x32xbf16, #tpu.memory_space<vmem>>, vector<8x32xbf16>
    %c0_3 = arith.constant 0 : index
    %c0_4 = arith.constant 0 : index
    %6 = vector.load %arg4[%c0_3, %c0_4] : memref<32x128xbf16, #tpu.memory_space<vmem>>, vector<32x128xbf16>
    %cst = arith.constant dense<0.000000e+00> : vector<8x128xf32>
    %7 = tpu.matmul %5, %6, %cst {dimension_numbers = #tpu.dot_dimension_numbers<[1], [0], [0], [1], [0, 0, 1, 1], [], []>} : vector<8x32xbf16>, vector<32x128xbf16>, vector<8x128xf32> -> vector<8x128xf32>
    %c0_5 = arith.constant 0 : index
    %c0_6 = arith.constant 0 : index
    %8 = vector.load %arg5[%c0_5, %c0_6] : memref<1x128xf32, #tpu.memory_space<vmem>>, vector<1x128xf32>
    %9 = vector.broadcast %8 : vector<1x128xf32> to vector<8x128xf32>
    %10 = arith.addf %7, %9 : vector<8x128xf32>
    %c0_i32_7 = arith.constant 0 : i32
    %11 = arith.cmpi eq, %arg1, %c0_i32_7 : i32
    %12 = arith.extui %11 : i1 to i32
    %c0_i32_8 = arith.constant 0 : i32
    %13 = arith.cmpi ne, %12, %c0_i32_8 : i32
    scf.if %13 {
      %c0_10 = arith.constant 0 : index
      %c0_11 = arith.constant 0 : index
      %17 = vector.load %arg12[%c0_10, %c0_11] : memref<8x1xf32, #tpu.memory_space<vmem>>, vector<8x1xf32>
      %cst_12 = arith.constant dense<0xFF800000> : vector<8xf32>
      %18 = vector.multi_reduction <maximumf>, %10, %cst_12 [1] : vector<8x128xf32> to vector<8xf32>
      %19 = vector.shape_cast %18 : vector<8xf32> to vector<8x1xf32>
      %20 = arith.maximumf %17, %19 : vector<8x1xf32>
      %c0_13 = arith.constant 0 : index
      %c0_14 = arith.constant 0 : index
      %21 = vector.load %arg13[%c0_13, %c0_14] : memref<8x1xf32, #tpu.memory_space<vmem>>, vector<8x1xf32>
      %22 = arith.subf %17, %20 : vector<8x1xf32>
      %23 = math.exp %22 : vector<8x1xf32>
      %24 = arith.mulf %21, %23 : vector<8x1xf32>
      %25 = vector.broadcast %20 : vector<8x1xf32> to vector<8x128xf32>
      %26 = arith.subf %10, %25 : vector<8x128xf32>
      %27 = math.exp %26 : vector<8x128xf32>
      %cst_15 = arith.constant dense<0.000000e+00> : vector<8xf32>
      %28 = vector.multi_reduction <add>, %27, %cst_15 [1] : vector<8x128xf32> to vector<8xf32>
      %29 = vector.shape_cast %28 : vector<8xf32> to vector<8x1xf32>
      %30 = arith.addf %24, %29 : vector<8x1xf32>
      %c0_16 = arith.constant 0 : index
      %c0_17 = arith.constant 0 : index
      %31 = vector.load %arg13[%c0_16, %c0_17] : memref<8x1xf32, #tpu.memory_space<vmem>>, vector<8x1xf32>
      tpu.vector_store %arg13[%c0_16, %c0_17], %30 {strides = array<i32>} : memref<8x1xf32, #tpu.memory_space<vmem>>, vector<8x1xf32>,
      %c0_18 = arith.constant 0 : index
      %c0_19 = arith.constant 0 : index
      %32 = vector.load %arg12[%c0_18, %c0_19] : memref<8x1xf32, #tpu.memory_space<vmem>>, vector<8x1xf32>
      tpu.vector_store %arg12[%c0_18, %c0_19], %20 {strides = array<i32>} : memref<8x1xf32, #tpu.memory_space<vmem>>, vector<8x1xf32>,
    } else {
    }
    %c1_i32 = arith.constant 1 : i32
    %14 = arith.cmpi eq, %arg1, %c1_i32 : i32
    %15 = arith.extui %14 : i1 to i32
    %c0_i32_9 = arith.constant 0 : i32
    %16 = arith.cmpi ne, %15, %c0_i32_9 : i32
    scf.if %16 {
      %c0_10 = arith.constant 0 : index
      %c0_11 = arith.constant 0 : index
      %17 = vector.load %arg13[%c0_10, %c0_11] : memref<8x1xf32, #tpu.memory_space<vmem>>, vector<8x1xf32>
      %18 = tpu.reciprocal %17 {approx = true} : vector<8x1xf32> -> vector<8x1xf32>
      %19 = arith.mulf %17, %18 : vector<8x1xf32>
      %cst_12 = arith.constant 2.000000e+00 : f32
      %20 = vector.broadcast %cst_12 : f32 to vector<8x1xf32>
      %21 = arith.subf %20, %19 : vector<8x1xf32>
      %22 = arith.mulf %18, %21 : vector<8x1xf32>
      %c0_13 = arith.constant 0 : index
      %c0_14 = arith.constant 0 : index
      %23 = vector.load %arg12[%c0_13, %c0_14] : memref<8x1xf32, #tpu.memory_space<vmem>>, vector<8x1xf32>
      %24 = vector.broadcast %23 : vector<8x1xf32> to vector<8x128xf32>
      %25 = arith.subf %10, %24 : vector<8x128xf32>
      %26 = math.exp %25 : vector<8x128xf32>
      %27 = vector.broadcast %22 : vector<8x1xf32> to vector<8x128xf32>
      %28 = arith.mulf %26, %27 : vector<8x128xf32>
      %c0_15 = arith.constant 0 : index
      %c0_16 = arith.constant 0 : index
      %29 = vector.load %arg14[%c0_15, %c0_16] : memref<8x1xf32, #tpu.memory_space<vmem>>, vector<8x1xf32>
      %30 = vector.broadcast %29 : vector<8x1xf32> to vector<8x128xf32>
      %31 = arith.mulf %28, %30 : vector<8x128xf32>
      %c0_17 = arith.constant 0 : index
      %c0_18 = arith.constant 0 : index
      %32 = vector.load %arg10[%c0_17, %c0_18] : memref<8x128xf32, #tpu.memory_space<vmem>>, vector<8x128xf32>
      tpu.vector_store %arg10[%c0_17, %c0_18], %31 {strides = array<i32>} : memref<8x128xf32, #tpu.memory_space<vmem>>, vector<8x128xf32>,
    } else {
    }
    return
  }
  func.func @transform_0(%arg0: i32, %arg1: i32, %arg2: i32) -> (i32, i32) {
    %c0_i32 = arith.constant 0 : i32
    %c0_i32_0 = arith.constant 0 : i32
    return %arg0, %c0_i32 : i32, i32
  }
  func.func @transform_1(%arg0: i32, %arg1: i32, %arg2: i32) -> (i32, i32) {
    %c0_i32 = arith.constant 0 : i32
    %c0_i32_0 = arith.constant 0 : i32
    return %c0_i32, %arg2 : i32, i32
  }
  func.func @transform_2(%arg0: i32, %arg1: i32, %arg2: i32) -> (i32, i32) {
    %c0_i32 = arith.constant 0 : i32
    %c0_i32_0 = arith.constant 0 : i32
    return %c0_i32, %arg2 : i32, i32
  }
  func.func @transform_3(%arg0: i32, %arg1: i32, %arg2: i32) -> (i32, i32) {
    %c0_i32 = arith.constant 0 : i32
    %c0_i32_0 = arith.constant 0 : i32
    %c0_i32_1 = arith.constant 0 : i32
    return %c0_i32, %c0_i32_0 : i32, i32
  }
  func.func @transform_4(%arg0: i32, %arg1: i32, %arg2: i32) -> (i32, i32) {
    %c0_i32 = arith.constant 0 : i32
    %c0_i32_0 = arith.constant 0 : i32
    %c0_i32_1 = arith.constant 0 : i32
    return %c0_i32, %c0_i32_0 : i32, i32
  }
  func.func @transform_5(%arg0: i32, %arg1: i32, %arg2: i32) -> (i32, i32) {
    %c0_i32 = arith.constant 0 : i32
    %c0_i32_0 = arith.constant 0 : i32
    return %arg0, %c0_i32 : i32, i32
  }
  func.func @transform_6(%arg0: i32, %arg1: i32, %arg2: i32) -> (i32, i32) {
    %c0_i32 = arith.constant 0 : i32
    %c0_i32_0 = arith.constant 0 : i32
    %c0_i32_1 = arith.constant 0 : i32
    return %c0_i32, %c0_i32_0 : i32, i32
  }
  func.func @transform_7(%arg0: i32, %arg1: i32, %arg2: i32) -> (i32, i32) {
    %0 = arith.muli %arg1, %arg2 : i32
    %c0_i32 = arith.constant 0 : i32
    return %arg0, %0 : i32, i32
  }
  func.func @transform_8(%arg0: i32, %arg1: i32, %arg2: i32) -> (i32, i32) {
    %c0_i32 = arith.constant 0 : i32
    %c0_i32_0 = arith.constant 0 : i32
    return %arg0, %c0_i32 : i32, i32
  }
}

</mosaic_0001>

<bundles_post_ra>
// kernel: tpu_custom_call.1
= control target key start
LH: loop header
LB: loop body
LE: loop exit
PB: predicated region body
PF: predicated region fallthrough
CT: control target
= control target key end

     0   :  { %s1507_s0 = inlined_call_operand.hbm [shape: bf16[8,32], index: 0, kind: input, shape index: {}]   ;;  %s1508_s1 = inlined_call_operand.hbm [shape: bf16[32,128], index: 1, kind: input, shape index: {}]   ;;  %s1509_s2 = inlined_call_operand.vmem [shape: f32[1,128], index: 2, kind: input, shape index: {}]   ;;  %s1510_s3 = inlined_call_operand.hbm [shape: f32[1,32], index: 3, kind: input, shape index: {}]   ;;  %s1511_s4 = inlined_call_operand.<no memory space> [shape: f32[1,1], index: 4, kind: input, shape index: {}]   ;;  %s1512_s5 = inlined_call_operand.vmem [shape: f32[8,8], index: 5, kind: input, shape index: {}]   ;;  %s1513_s6 = inlined_call_operand.hbm [shape: f32[8,256], index: 6, kind: input, shape index: {}]   ;;  %s1514_s7 = inlined_call_operand.hbm [shape: f32[8,128], index: 7, kind: output, shape index: {0}]   ;;  %s1515_s8 = inlined_call_operand.hbm [shape: f32[8,128], index: 8, kind: output, shape index: {1}]  }
   0x1   :  { %v14_v0 = vstv %s1511_s4 }
   0x2   :  { %15 = vst [vmem:[#allocation5] sm:$0x1] %v14_v0 }
   0x3   :  { %16 = vsyncpa [#allocation7], 0 }
   0x4   :  { %17 = vsyncpa [#allocation10], 0 }
   0x5   :  { %18 = vsyncpa [#allocation13], 0 }
   0x6   :  { %19 = vsyncpa [#allocation8], 0 }
   0x7   :  { %21 = vsyncpa [#allocation8 + $0x1], 0 }
   0x8   :  { %22 = vsyncpa [#allocation16], 0  ;;  %s1363_s29 = smov 0   ;;  %s1365_s30 = smov 0  }
   0x9   :  { %s1367_s9 = smov 0  }
   0xa LB: > { %s1299_s4 = smov [#allocation9]   ;;  %s933_s11 = sadd.s32 4294967295, %s1297_s9   ;;  %s1297_s9 = sphi %s1367_s9, %s28_s9   ;;  %s1293_s30 = sphi %s1365_s30, %s1522_s30   ;;  %s1289_s29 = sphi %s1363_s29, %s1521_s29  }
   0xb   : > { %s302_s10 = sshll.u32 %s1299_s4, 4  ;;  %s934_s12 = sadd.s32 4294967294, %s1297_s9   ;;  %s303_s10 = int_to_ptr.vmem [resolvable:$true] %s302_s10 }
   0xc   : > { %p935_p0 = scmp.ge.s32.totalorder %s1297_s9, 1  ;;  %p275_p1 = scmp.lt.s32.totalorder %s1297_s9, 3 }
   0xd   : > { %p1384_p2 = scmp.eq.s32.totalorder %s933_s11, 0  ;;  %s43_s16 = sadd.s32 1, %s1293_s30 }
   0xe   : > { %p1388_p3 = pnand %p935_p0, %p275_p1  ;;  %p1401_p6 = scmp.ge.s32.totalorder %s43_s16, 2 }
   0xf   : > { %s1114_s18 = scalar_lea.vmem %s303_s10, 256  ;;  %p1122_p11 = scmp.lt.s32.totalorder %s303_s10, %s303_s10 }
  0x10   : > { %p1015_p4 = pneg %p1388_p3  ;;  %p1115_p8 = scmp.ne.s32.totalorder %s303_s10, %s1114_s18 }
  0x11   : > { %p1123_p12 = scmp.lt.s32.totalorder %s1114_s18, %s1114_s18 }
  0x12   : > { %p1396_p5 = pnand %p1384_p2, %p1015_p4 }
  0x13   : > { %p1124_p13 = por %p1123_p12, %p1122_p11 }
  0x14   : > { %p1105_p7 = pneg %p1396_p5 }
  0x16   : > { %p1117_p9 = pnand %p1115_p8, %p1105_p7 }
  0x18   : > { %p1118_p10 = pneg %p1117_p9 }
  0x1a   : > { %p1125_p0 = pnand %p1124_p13, %p1118_p10 }
  0x1c   : > { %1128 = shalt.err (!%p1125_p0)
}
  0x1d   : > { %s1300_s19 = smov 64   ;;  %s1301_s20 = smov 4  }
  0x1e   : > { %1021 = dma.hbm_to_vmem [thread:$0]  (!%p1396_p5), %s1508_s1, 256, %s303_s10, [#allocation10], %s1300_s19, %s1300_s19, %s1301_s20  }
  0x1f   : > { %s1524_s16 = smov (%p1401_p6, %s43_s16), 0  ;;  %s1302_s23 = smov [#allocation6]  }
  0x20   : > { %s290_s24 = sshll.u32 %s1302_s23, 4  ;;  %s1303_s25 = smov [#allocation11]   ;;  %s291_s24 = int_to_ptr.vmem [resolvable:$true] %s290_s24 }
  0x21   : > { %s322_s26 = sshll.u32 %s1303_s25, 4  ;;  %s1140_s27 = scalar_lea.vmem %s291_s24, 64  ;;  %s323_s26 = int_to_ptr.vmem [resolvable:$true] %s322_s26 }
  0x22   : > { %p1141_p1 = scmp.ne.s32.totalorder %s291_s24, %s1140_s27  ;;  %p1148_p9 = scmp.lt.s32.totalorder %s291_s24, %s291_s24 }
  0x23   : > { %p1149_p10 = scmp.lt.s32.totalorder %s1140_s27, %s1140_s27 }
  0x24   : > { %p1143_p4 = pnand %p1141_p1, %p1105_p7 }
  0x25   : > { %p1150_p11 = por %p1149_p10, %p1148_p9 }
  0x26   : > { %p1144_p8 = pneg %p1143_p4 }
  0x28   : > { %p1151_p12 = pnand %p1150_p11, %p1144_p8 }
  0x2a   : > { %1154 = shalt.err (!%p1151_p12)
}
  0x2b   : > { %1018 = dma.hbm_to_vmem [thread:$0]  (!%p1396_p5), %s1507_s0, 64, %s291_s24, [#allocation7]  }
  0x2c   : > { %s1166_s10 = scalar_lea.vmem %s323_s26, 16  ;;  %s1173_s17 = scalar_lea.vmem %s323_s26, 32 }
  0x2d   : > { %p1167_p6 = scmp.ne.s32.totalorder %s323_s26, %s1166_s10  ;;  %p1174_p1 = scmp.lt.s32.totalorder %s323_s26, %s323_s26 }
  0x2e   : > { %p1175_p4 = scmp.lt.s32.totalorder %s1173_s17, %s1166_s10 }
  0x2f   : > { %p1169_p13 = pnand %p1167_p6, %p1105_p7 }
  0x30   : > { %p1176_p9 = por %p1175_p4, %p1174_p1 }
  0x31   : > { %p1170_p0 = pneg %p1169_p13 }
  0x33   : > { %p1177_p8 = pnand %p1176_p9, %p1170_p0 }
  0x35   : > { %1180 = shalt.err (!%p1177_p8)
}
  0x36   : > { %1024 = dma.hbm_to_vmem [thread:$0]  (!%p1396_p5), %s1510_s3, 16, %s323_s26, [#allocation10]  }
  0x37   : > { %s1304_s20 = smov [#allocation12]  }
  0x38   : > { %s343_s21 = sshll.u32 %s1304_s20, 4  ;;  %s344_s21 = int_to_ptr.vmem [resolvable:$true] %s343_s21 }
  0x39   : > { %s1192_s22 = scalar_lea.vmem %s344_s21, 256  ;;  %p1200_p6 = scmp.lt.s32.totalorder %s344_s21, %s344_s21 }
  0x3a   : > { %p1193_p10 = scmp.ne.s32.totalorder %s344_s21, %s1192_s22  ;;  %p1201_p13 = scmp.lt.s32.totalorder %s1192_s22, %s1192_s22 }
  0x3c   : > { %p1195_p11 = pnand %p1193_p10, %p1105_p7  ;;  %p1202_p0 = por %p1201_p13, %p1200_p6 }
  0x3e   : > { %p1196_p12 = pneg %p1195_p11 }
  0x40   : > { %p1203_p1 = pnand %p1202_p0, %p1196_p12 }
  0x42   : > { %1206 = shalt.err (!%p1203_p1)
}
  0x43   : > { %1027 = dma.hbm_to_vmem [thread:$0]  (!%p1396_p5), %s1513_s6, 256, %s344_s21, [#allocation13]  }
  0x44   : > { %356 = sbr.rel (%p1388_p3) target bundleno = 1394 (0x572), region = 48 }
  0x49   : > { %1268 = dma.done.wait (%p1384_p2), [#allocation7], 64  }
  0x4a   : > { %1270 = vsyncadd (%p1384_p2), [#allocation7], 4294967232 }
  0x4b   : > { %1272 = dma.done.wait (%p1384_p2), [#allocation10], 272  }
  0x4c   : > { %1274 = vsyncadd (%p1384_p2), [#allocation10], 4294967024 }
  0x4d   : > { %1276 = dma.done.wait (%p1384_p2), [#allocation13], 256  }
  0x4e   : > { %1278 = vsyncadd (%p1384_p2), [#allocation13], 4294967040  ;;  %p413_p3 = scmp.eq.s32.totalorder %s1289_s29, 0 }
  0x4f   : > { %v422_v1 = vld [vmem:[#allocation6] sm:$0xf] (%p413_p3)  ;;  %v948_v2 = vld [vmem:[#allocation11] ss:$0 sm:$0xff] (%p413_p3)  ;;  %vm432_vm0 = vcmask (%p413_p3), 261120   ;;  %v1305_v6 = vmov (%p413_p3), 0   ;;  %v459_v19 = vlaneseq (%p413_p3) }
  0x50   : > { %418 = sbr.rel (!%p413_p3) target bundleno = 580 (0x244), region = 68  ;;  %v423_v3 = vunpack.c.l.bf16 (%p413_p3), %v422_v1  ;;  %1085 = vset.pattern.permute.xlu0 (%p413_p3), %v1305_v6  ;;  %v949_v7 = vld [vmem:[#allocation5] ss:$0 sm:$0xff] (%p413_p3)  ;;  %vm419_vm1 = vcmask (%p413_p3), 7168   ;;  %v1306_v13 = vmov (%p413_p3), 0.0   ;;  %v480_v15 = vld [vmem:[#allocation12] sm:$0xff] (%p413_p3) }
  0x51   : > { %421 = vst.msk [vmem:[#allocation3] sm:$0xff] (%p413_p3), %vm419_vm1, %v1306_v13  ;;  %973 = vmatprep.subr.mxu0 (%p413_p3), %v1306_v13  ;;  %978 = vmatprep.subr.mxu1 (%p413_p3), %v1306_v13  ;;  %v485_v14 = vld [vmem:[#allocation12 + $0x8] sm:$0xff] (%p413_p3)  ;;  %vm1307_vm2 = vmmov (%p413_p3), 0   ;;  %v1308_v17 = vmov (%p413_p3), -1e+30   ;;  %v460_v20 = vshrl.u32 (%p413_p3), %v459_v19, 7 }
  0x52   : > { %v431_v4 = vmul.f32 (%p413_p3), %v948_v2, %v423_v3  ;;  %974 = vmatpush3.msra.mxu0 (%p413_p3), %v485_v14  ;;  %975 = vmatprep.mubr.msk.f32.mxu0 (%p413_p3), %vm1307_vm2, %v1306_v13  ;;  %420 = vst.msk [vmem:[#allocation2] sm:$0xff] (%p413_p3), %vm419_vm1, %v1308_v17  ;;  %v452_v22 = vld [vmem:[%s1512_s5] sm:$0xff] (%p413_p3)  ;;  %vm486_vm5 = vcmask (%p413_p3), 64512  }
  0x53   : > { %979 = vmatpush3.msra.mxu1 (%p413_p3), %v480_v15  ;;  %980 = vmatprep.mubr.msk.f32.mxu1 (%p413_p3), %vm1307_vm2, %v1306_v13  ;;  %v468_v21 = vand.u32 (%p413_p3), 1, %v460_v20 }
  0x54   : > { %v433_v5 = vsel (%p413_p3), %vm432_vm0, %v431_v4, 0.0 }
  0x55   : > { %434 = vadd.xlane.f32.xlu0 %v433_v5  ;;  %vm476_vm3 = vcmp.eq.s32.totalorder %v468_v21, 0  ;;  %vm481_vm4 = vcmp.eq.s32.totalorder %v468_v21, 1 }
  0xde   : > { %v435_v8 = vpop.xlane.xlu0 %434 }
  0xdf   : > { %v443_v9 = vadd.f32 %v949_v7, %v435_v8 }
  0xe1   : > { %v950_v10 = vmul.f32 -1.442695, %v443_v9 }
  0xe3   : > { %1086 = vpow2.f32 %v950_v10 }
  0xf0   : > { %v1087_v11 = vpop.eup %1086 }
  0xf1   : > { %v447_v12 = vadd.f32 1.0, %v1087_v11 }
  0xf3   : > { %1088 = vrcp.f32 %v447_v12 }
 0x100   : > { %v1089_v16 = vpop.eup %1088 }
 0x101   : > { %455 = vperm.xlu0 %1085, %v1089_v16   ;;  %v450_v18 = vsub.f32 1.0, %v1089_v16 }
 0x103   : > { %451 = vst.msk [vmem:[#allocation4] sm:$0xff] %vm419_vm1, %v450_v18 }
 0x17c   : > { %v456_v23 = vpop.permute.xlu0 %455 }
 0x17d   : > { %v458_v24 = vmul.f32 %v456_v23, %v452_v22 }
 0x17f   : > { %v479_v25 = vsel %vm476_vm3, %v458_v24, 0.0  ;;  %v484_v26 = vsel %vm481_vm4, %v458_v24, 0.0 }
 0x180   : > { %976 = vmatmul.mubr.msk.f32.vlgmr.msra.gmra.mxu0 %vm486_vm5, %v484_v26  ;;  %981 = vmatmul.mubr.msk.f32.vlgmr.msra.gmra.mxu1 %vm486_vm5, %v479_v25 }
 0x240   : > { %v556_v27 = vpop.f32.mrf.mxu0  ;;  %v629_v28 = vpop.f32.mrf.mxu1 }
 0x241   : > { %v630_v29 = vadd.f32 %v629_v28, %v556_v27 }
 0x242   : > { %v977_v30 = vpop.f32.mrf.mxu0  ;;  %v982_v31 = vpop.f32.mrf.mxu1 }
 0x243   : > { %633 = vst [vmem:[#allocation15] sm:$0xff] %v630_v29 }
 0x244 PF: > { %v1090_v32 = vld [vmem:[#allocation9 + $0x8] sm:$0xff]   ;;  %v1309_v33 = vmov 0.0   ;;  %v1091_v34 = vld [vmem:[#allocation9] sm:$0xff]   ;;  %vm1310_vm6 = vmmov 0   ;;  %v634_v35 = vld [vmem:[#allocation6] sm:$0xf] }
 0x245   : > { %983 = vmatprep.subr.bf16.mxu0 %v1309_v33  ;;  %987 = vmatprep.mubr.msk.bf16.mxu0 %vm1310_vm6, %v1309_v33  ;;  %vm658_vm7 = vcmask 261120   ;;  %v953_v36 = vld [vmem:[%s1509_s2] ss:$0 sm:$0xff]  ;;  %p957_p2 = scmp.ne.s32.totalorder %s1289_s29, 0 }
 0x246   : > { %984 = vmatpush3.bf16.msra.mxu0 %v1090_v32 }
 0x247   : > { %985 = vmatprep.subr.bf16.mxu0 %v1309_v33 }
 0x24a   : > { %986 = vmatpush3.bf16.msra.mxu0 %v1091_v34 }
 0x24d   : > { %988 = vmatmul.mubr.msk.bf16.vlgmr.msra.gmra.mxu0 %vm658_vm7, %v634_v35 }
 0x30d   : > { %v696_v37 = vpop.f32.mrf.mxu0 }
 0x30e   : > { %v697_v38 = vadd.f32 %v953_v36, %v696_v37 }
 0x30f   : > { %v989_v39 = vpop.f32.mrf.mxu0  ;;  %704 = sbr.rel (%p957_p2) target bundleno = 1211 (0x4bb), region = 72 }
 0x311   : > { %v699_v40 = vpop.f32.mrf.mxu0 }
 0x313   : > { %v990_v41 = vpop.f32.mrf.mxu0 }
 0x314   : > { %706 = vmax.xlane.f32.xlu0 %v697_v38  ;;  %v1311_v42 = vmov 0   ;;  %v705_v43 = vld [vmem:[#allocation2] sm:$0xff]  ;;  %vm725_vm8 = vcmask 7168   ;;  %v709_v53 = vld [vmem:[#allocation3] sm:$0xff] }
 0x315   : > { %1092 = vset.pattern.permute.xlu0 %v1311_v42 }
 0x39d   : > { %v707_v44 = vpop.xlane.xlu0 %706 }
 0x39e   : > { %v708_v45 = vmax.f32 %v705_v43, %v707_v44 }
 0x3a0   : > { %v710_v46 = vsub.f32 %v705_v43, %v708_v45  ;;  %727 = vst.msk [vmem:[#allocation2] sm:$0xff] %vm725_vm8, %v708_v45  ;;  %716 = vperm.xlu0 %1092, %v708_v45  }
 0x3a2   : > { %v711_v51 = vmul.f32 1.442695, %v710_v46 }
 0x41b   : > { %v717_v47 = vpop.permute.xlu0 %716 }
 0x41c   : > { %v719_v48 = vsub.f32 %v697_v38, %v717_v47 }
 0x41e   : > { %v720_v49 = vmul.f32 1.442695, %v719_v48 }
 0x420   : > { %1093 = vpow2.f32 %v720_v49 }
 0x421   : > { %1095 = vpow2.f32 %v711_v51 }
 0x42d   : > { %v1094_v50 = vpop.eup %1093 }
 0x42e   : > { %722 = vadd.xlane.f32.xlu1 %v1094_v50  ;;  %v1096_v52 = vpop.eup %1095 }
 0x42f   : > { %v713_v54 = vmul.f32 %v1096_v52, %v709_v53 }
 0x4b7   : > { %v723_v55 = vpop.xlane.xlu1 %722 }
 0x4b8   : > { %v724_v56 = vadd.f32 %v723_v55, %v713_v54 }
 0x4ba   : > { %726 = vst.msk [vmem:[#allocation3] sm:$0xff] %vm725_vm8, %v724_v56 }
 0x4bb PF: > { %p958_p5 = scmp.ne.s32.totalorder %s1289_s29, 1 }
 0x4bd   : > { %731 = sbr.rel (%p958_p5) target bundleno = 1368 (0x558), region = 76 }
 0x4c2   : > { %v737_v57 = vld [vmem:[#allocation2] sm:$0xff]  ;;  %v732_v58 = vld [vmem:[#allocation3] sm:$0xff]  ;;  %v752_v59 = vld [vmem:[#allocation4] sm:$0xff]  ;;  %v1312_v60 = vmov 0  }
 0x4c3   : > { %1097 = vset.pattern.permute.xlu0 %v1312_v60  ;;  %1099 = vrcp.f32 %v732_v58  ;;  %1098 = vset.pattern.permute.xlu1 %v1312_v60 }
 0x4c4   : > { %740 = vperm.xlu0 %1097, %v737_v57   ;;  %755 = vperm.xlu1 %1098, %v752_v59  }
 0x4d0   : > { %v1100_v61 = vpop.eup %1099 }
 0x4d1   : > { %v734_v62 = vmul.f32 %v1100_v61, %v732_v58 }
 0x4d3   : > { %v735_v63 = vsub.f32 2.0, %v734_v62 }
 0x4d5   : > { %v736_v0 = vmul.f32 %v1100_v61, %v735_v63 }
 0x4d7   : > { %748 = vperm.xlu0 %1097, %v736_v0  }
 0x53f   : > { %v741_v1 = vpop.permute.xlu0 %740  ;;  %v756_v6 = vpop.permute.xlu1 %755 }
 0x540   : > { %v743_v2 = vsub.f32 %v697_v38, %v741_v1 }
 0x542   : > { %v744_v3 = vmul.f32 1.442695, %v743_v2 }
 0x544   : > { %1101 = vpow2.f32 %v744_v3 }
 0x551   : > { %v1102_v4 = vpop.eup %1101 }
 0x552   : > { %v749_v5 = vpop.permute.xlu0 %748 }
 0x553   : > { %v751_v7 = vmul.f32 %v1102_v4, %v749_v5 }
 0x555   : > { %v758_v8 = vmul.f32 %v756_v6, %v751_v7 }
 0x557   : > { %759 = vst [vmem:[#allocation14] sm:$0xff] %v758_v8 }
 0x558 PF: > { %p1473_p7 = scmp.eq.s32.totalorder %s933_s11, 1  ;;  %s1313_s26 = smov [#allocation14]  }
 0x559   : > { %s776_s27 = sshll.u32 %s1313_s26, 4  ;;  %s1314_s28 = smov [#allocation15]   ;;  %s777_s27 = int_to_ptr.vmem [resolvable:$true] %s776_s27 }
 0x55a   : > { %s789_s4 = sshll.u32 %s1314_s28, 4  ;;  %s1207_s10 = scalar_lea.vmem %s777_s27, 128  ;;  %s790_s4 = int_to_ptr.vmem [resolvable:$true] %s789_s4 }
 0x55b   : > { %p1208_p4 = scmp.ne.s32.totalorder %s777_s27, %s1207_s10  ;;  %s1213_s17 = scalar_lea.vmem %s777_s27, 256 }
 0x55c   : > { %p1214_p10 = scmp.lt.s32.totalorder %s777_s27, %s777_s27  ;;  %p1215_p11 = scmp.lt.s32.totalorder %s1213_s17, %s1207_s10 }
 0x55d   : > { %p1209_p9 = pnand %p1208_p4, %p1473_p7 }
 0x55e   : > { %p1216_p12 = por %p1215_p11, %p1214_p10 }
 0x55f   : > { %p1210_p8 = pneg %p1209_p9 }
 0x561   : > { %p1217_p6 = pnand %p1216_p12, %p1210_p8 }
 0x563   : > { %1220 = shalt.err (!%p1217_p6)
}
 0x564   : > { %1008 = dma.vmem_to_hbm [thread:$0]  (%p1473_p7), %s777_s27, 128, %s1514_s7, [#allocation8]  }
 0x565   : > { %s1231_s19 = scalar_lea.vmem %s790_s4, 128  ;;  %p1238_p3 = scmp.lt.s32.totalorder %s790_s4, %s790_s4 }
 0x566   : > { %p1232_p13 = scmp.ne.s32.totalorder %s790_s4, %s1231_s19  ;;  %p1239_p2 = scmp.lt.s32.totalorder %s1231_s19, %s1231_s19 }
 0x568   : > { %p1233_p0 = pnand %p1232_p13, %p1473_p7  ;;  %p1240_p5 = por %p1239_p2, %p1238_p3 }
 0x56a   : > { %p1234_p1 = pneg %p1233_p0 }
 0x56c   : > { %p1241_p4 = pnand %p1240_p5, %p1234_p1 }
 0x56e   : > { %1244 = shalt.err (!%p1241_p4)
}
 0x56f   : > { %1010 = dma.vmem_to_hbm [thread:$0]  (%p1473_p7), %s790_s4, 128, %s1515_s8, [#allocation16]  }
 0x570   : > { %1280 = dma.done.wait (%p1473_p7), [#allocation16], 128  }
 0x571   : > { %1282 = vsyncadd (%p1473_p7), [#allocation16], 4294967168 }
 0x572 PF: > { %p1043_p9 = scmp.ge.s32.totalorder %s1297_s9, 2  ;;  %p1044_p8 = scmp.eq.s32.totalorder %s934_s12, 1 }
 0x574   : > { %p1029_p10 = pnand %p1044_p8, %p1043_p9 }
 0x576   : > { %p1030_p11 = pneg %p1029_p10 }
 0x578   : > { %1284 = dma.done.wait (%p1030_p11), [#allocation8], 128  }
 0x579   : > { %1286 = vsyncadd (%p1030_p11), [#allocation8], 4294967168  ;;  %s28_s9 = sadd.s32 1, %s1297_s9   ;;  %s1521_s29 = smov %s1293_s30 }
 0x57a   : > { %p25_p12 = scmp.ge.s32.totalorder %s28_s9, 4   ;;  %s1522_s30 = smov %s1524_s16 }
 0x57c   :  { %27 = sbr.rel (!%p25_p12) target bundleno = 10 (0xa), region = 126 }
 0x581   :  { %811 = vsyncpa [#allocation7], 1 }
 0x582   :  { %813 = vsyncpa [#allocation7 + $0x1], 1 }
 0x583   :  { %814 = vsyncpa [#allocation10], 1 }
 0x584   :  { %815 = vsyncpa [#allocation13], 1 }
 0x585   :  { %816 = vsyncpa [#allocation8], 1 }
 0x586   :  { %818 = vsyncpa [#allocation8 + $0x1], 1 }
 0x587   :  { %819 = vsyncpa [#allocation16], 1 }

</bundles_post_ra>
